<compile_context>
chip_gen: v7x
topology: tpu7x:2x2x1
jax: 0.10.0
libtpu: 0.0.40
codegen_flags: <defaults>
</compile_context>

<pallas_src>
import functools

import jax
import jax.numpy as jnp
from jax.experimental import pallas as pl
from jax.experimental.pallas import tpu as pltpu

BN_EPS = 1e-5

_VMEM_BUDGET_BYTES = 26 * 1024 * 1024   # total estimated working set target
_VMEM_LIMIT_BYTES = 32 * 1024 * 1024    # scoped VMEM limit (safe on v5e/v6e/v7x)


def _round_up(x, m):
    return (x + m - 1) // m * m


def _classifier2_kernel(x_ref, w1t_ref, p_ref, out_ref, acc_ref, *, hw, mid):
    """Grid = (batch_tiles, hw_tiles); the hw (reduction) axis is last.

    x_ref:   (b_tile, C, hw_tile)  input tile (edge blocks may be partial)
    w1t_ref: (C, mid_out)          BN/mean-folded W1^T (zero-padded columns)
    p_ref:   (3, mid_out)          row0 = b1', row1 = w2 row, row2[0] = b2
    out_ref: (b_tile, mid_out)     columns [0, mid) = feat, column mid = pred
    acc_ref: (b_tile, C) f32       spatial-sum accumulator (VMEM scratch)
    """
    hi = pl.program_id(1)

    @pl.when(hi == 0)
    def _init():
        acc_ref[...] = jnp.zeros_like(acc_ref)

    x = x_ref[...].astype(jnp.float32)
    hw_tile = x.shape[-1]
    if hw % hw_tile != 0:
        # Last hw tile is partial: lanes beyond the valid extent contain undefined data
        # (OOB block read) -> mask them before summing.  (Static no-op when divisible.)
        lane_idx = jax.lax.broadcasted_iota(jnp.int32, (1, 1, hw_tile), 2)
        valid = (hi * hw_tile + lane_idx) < hw
        x = jnp.where(valid, x, 0.0)

    # Partial spatial sum: lane reduce over the hw tile (f32 accumulation).
    acc_ref[...] += jnp.sum(x, axis=-1)

    @pl.when(hi == pl.num_programs(1) - 1)
    def _finalize():
        pooled = acc_ref[...]                                        # (b_tile, C)
        h = jnp.dot(pooled, w1t_ref[...],
                    preferred_element_type=jnp.float32)              # (b_tile, mid_out)
        feat = jnp.maximum(h + p_ref[0:1, :], 0.0)                   # folded bias + ReLU

        # Linear(mid, 1) as VPU multiply + lane reduce (no degenerate N=1 MXU matmul).
        pred = jnp.sum(feat * p_ref[1:2, :], axis=-1, keepdims=True) + p_ref[2:3, 0:1]

        # Pack pred into the spare lane column `mid` of the lane-dense output block.
        col = jax.lax.broadcasted_iota(jnp.int32, feat.shape, 1)
        out_ref[...] = jnp.where(col == mid, pred, feat).astype(out_ref.dtype)


def _choose_tiles(B, C, HW, itemsize, mid_out):
    """Sublane/lane-aware tile sizing under a ~26 MiB total VMEM working-set budget."""
    lane = 128
    sub = {4: 8, 2: 16, 1: 32}.get(itemsize, 8)
    c_sub = _round_up(C, sub)
    hw_full_lanes = _round_up(HW, lane)

    # Batch tile: multiple of 8 (output-block sublane rule), or all of B when B < 8.
    if B < 8:
        b_tile = B
    else:
        b_tile = min(128, _round_up(B, 8))
        # v7x megacore: prefer >= 2 batch tiles so both TensorCores get work.
        while b_tile > 8 and pl.cdiv(B, b_tile) < 2:
            b_tile = max(8, _round_up(b_tile // 2, 8))

    def total_bytes(bt, ht_lanes):
        x = 2 * bt * c_sub * ht_lanes * itemsize                 # double-buffered x
        w = 2 * _round_up(C, 8) * mid_out * 4                    # w1t
        pv = 2 * 8 * mid_out * 4                                 # packed vectors
        o = 2 * _round_up(bt, 8) * mid_out * 4                   # output block
        a = _round_up(bt, 8) * _round_up(C, lane) * 4            # acc scratch
        return x + w + pv + o + a

    # Shrink the batch tile until at least one 128-lane hw step fits the budget.
    while b_tile > 8 and total_bytes(b_tile, lane) > _VMEM_BUDGET_BYTES:
        b_tile = max(8, _round_up(b_tile // 2, 8))

    # hw tile: full HW row per block when it fits (full-dim blocks are exempt from the
    # 128-multiple rule and give fully contiguous DMA rows), else largest 128-multiple.
    if total_bytes(b_tile, hw_full_lanes) <= _VMEM_BUDGET_BYTES:
        hw_tile = HW
    else:
        avail = _VMEM_BUDGET_BYTES - total_bytes(b_tile, 0)
        per_lane = 2 * b_tile * c_sub * itemsize
        hw_tile = max(lane, (avail // per_lane) // lane * lane)
    return b_tile, hw_tile


def classifier2_forward(x_nchw, params, tile_override=None):
    """x_nchw: (B, C, H, W). Returns (pred (B, 1), feat (B, mid)) in float32."""
    B, C, H, W = x_nchw.shape
    HW = H * W
    mid = params["w1"].shape[0]
    mid_out = _round_up(mid + 1, 128)     # +1 guarantees a spare lane column for pred

    # No host-side pad / cast of x: only a (free) reshape.  Edge blocks handled in-kernel.
    x = x_nchw.reshape(B, C, HW)

    if tile_override is not None:
        b_tile, hw_tile = tile_override
    else:
        b_tile, hw_tile = _choose_tiles(B, C, HW, x.dtype.itemsize, mid_out)

    num_b = pl.cdiv(B, b_tile)
    num_hw = pl.cdiv(HW, hw_tile)
    b_out = num_b * b_tile                # output padded so all stores are in-bounds

    # Fold BatchNorm (eval) + the 1/(H*W) mean scale into the first Linear.
    scale = params["bn_gamma"] * jax.lax.rsqrt(params["bn_var"] + BN_EPS)       # (mid,)
    w1t = (params["w1"].astype(jnp.float32).T * scale[None, :]) / float(HW)     # (C, mid)
    b1 = (params["b1"] - params["bn_mean"]) * scale + params["bn_beta"]         # (mid,)
    w1t = jnp.pad(w1t, ((0, 0), (0, mid_out - mid)))

    # Pack the tiny vectors into a single lane-dense operand.
    p = jnp.zeros((3, mid_out), jnp.float32)
    p = p.at[0, :mid].set(b1.astype(jnp.float32))
    p = p.at[1, :mid].set(params["w2"].reshape(mid).astype(jnp.float32))
    p = p.at[2, 0].set(params["b2"].reshape(()).astype(jnp.float32))

    kernel = functools.partial(_classifier2_kernel, hw=HW, mid=mid)

    out = pl.pallas_call(
        kernel,
        out_shape=jax.ShapeDtypeStruct((b_out, mid_out), jnp.float32),
        grid_spec=pltpu.PrefetchScalarGridSpec(
            num_scalar_prefetch=0,
            grid=(num_b, num_hw),
            in_specs=[
                pl.BlockSpec((b_tile, C, hw_tile), lambda bi, hi: (bi, 0, hi)),
                pl.BlockSpec((C, mid_out), lambda bi, hi: (0, 0)),
                pl.BlockSpec((3, mid_out), lambda bi, hi: (0, 0)),
            ],
            out_specs=pl.BlockSpec((b_tile, mid_out), lambda bi, hi: (bi, 0)),
            scratch_shapes=[pltpu.VMEM((b_tile, C), jnp.float32)],
        ),
        compiler_params=pltpu.CompilerParams(
            dimension_semantics=("parallel", "arbitrary"),
            vmem_limit_bytes=_VMEM_LIMIT_BYTES),
    )(x, w1t, p)

    pred = out[:B, mid:mid + 1]
    feat = out[:B, :mid]
    return pred, feat


def make_params(key, in_channel, mid_channel):
    """Deterministic init matching the module's parameter shapes (eval-mode BN stats)."""
    k1, k2, k3, k4, k5, k6, k7, k8 = jax.random.split(key, 8)
    w1 = jax.random.normal(k1, (mid_channel, in_channel), jnp.float32) * jnp.sqrt(
        2.0 / in_channel)
    b1 = 0.1 * jax.random.normal(k2, (mid_channel,), jnp.float32)
    w2 = jax.random.normal(k3, (1, mid_channel), jnp.float32) * jnp.sqrt(
        2.0 / mid_channel)
    b2 = 0.1 * jax.random.normal(k4, (1,), jnp.float32)
    bn_gamma = 1.0 + 0.1 * jax.random.normal(k5, (mid_channel,), jnp.float32)
    bn_beta = 0.1 * jax.random.normal(k6, (mid_channel,), jnp.float32)
    bn_mean = 0.2 * jax.random.normal(k7, (mid_channel,), jnp.float32)
    bn_var = 0.5 + jnp.abs(jax.random.normal(k8, (mid_channel,), jnp.float32))
    return dict(w1=w1, b1=b1, w2=w2, b2=b2, bn_gamma=bn_gamma, bn_beta=bn_beta,
                bn_mean=bn_mean, bn_var=bn_var)


def _reference(x_nchw, params):
    pooled = jnp.mean(x_nchw, axis=(2, 3))                       # (B, C)
    h = pooled @ params["w1"].T + params["b1"]
    h = (h - params["bn_mean"]) / jnp.sqrt(params["bn_var"] + BN_EPS)
    h = h * params["bn_gamma"] + params["bn_beta"]
    feat = jnp.maximum(h, 0.0)
    pred = feat @ params["w2"].T + params["b2"]
    return pred, feat


if __name__ == "__main__":
    key = jax.random.PRNGKey(0)
    k1, k2, k3, k4 = jax.random.split(key, 4)

    # Case 1: default tiling -> single full-HW block, B < 8 so one full batch tile.
    B, C, H, W, MID = 4, 8, 16, 16, 32
    x = jax.random.normal(k1, (B, C, H, W), jnp.float32)
    params = make_params(k2, C, MID)
    pred, feat = classifier2_forward(x, params)
    jax.block_until_ready((pred, feat))
    pred_ref, feat_ref = _reference(x, params)
    assert pred.shape == (B, 1) and feat.shape == (B, MID)
    assert jnp.allclose(pred, pred_ref, atol=1e-4, rtol=1e-4)
    assert jnp.allclose(feat, feat_ref, atol=1e-4, rtol=1e-4)

    # Case 2: force the multi-step hw reduction with a masked partial last hw tile
    # (HW=400, hw_tile=128 -> 3 full + 1 partial) and a partial last batch tile
    # (B=12, b_tile=8 -> 2 batch tiles, second partial).
    B, C, H, W, MID = 12, 8, 20, 20, 32
    x = jax.random.normal(k3, (B, C, H, W), jnp.float32)
    params = make_params(k4, C, MID)
    pred, feat = classifier2_forward(x, params, tile_override=(8, 128))
    jax.block_until_ready((pred, feat))
    pred_ref, feat_ref = _reference(x, params)
    assert pred.shape == (B, 1) and feat.shape == (B, MID)
    assert jnp.allclose(pred, pred_ref, atol=1e-4, rtol=1e-4)
    assert jnp.allclose(feat, feat_ref, atol=1e-4, rtol=1e-4)

    print("KERNEL_OK")
</pallas_src>

<mosaic_0001>
module attributes {stable_mosaic.version = 11 : i64} {
  func.func @_classifier2_kernel(%arg0: i32, %arg1: i32, %arg2: memref<4x8x256xf32, #tpu.memory_space<vmem>>, %arg3: memref<8x128xf32, #tpu.memory_space<vmem>>, %arg4: memref<3x128xf32, #tpu.memory_space<vmem>>, %arg5: memref<4x128xf32, #tpu.memory_space<vmem>>, %arg6: memref<4x8xf32, #tpu.memory_space<vmem>>) attributes {dimension_semantics = [#tpu.dimension_semantics<parallel>, #tpu.dimension_semantics<arbitrary>], iteration_bounds = array<i64: 1, 1>, scalar_prefetch = 0 : i64, scratch_operands = 1 : i64, tpu.core_type = #tpu.core_type<tc>, window_params = [{transform_indices = @transform_0, window_bounds = array<i64: 4, 8, 256>}, {pipeline_mode = #tpu.pipeline_mode<synchronous>, transform_indices = @transform_1, window_bounds = array<i64: 8, 128>}, {pipeline_mode = #tpu.pipeline_mode<synchronous>, transform_indices = @transform_2, window_bounds = array<i64: 3, 128>}, {transform_indices = @transform_3, window_bounds = array<i64: 4, 128>}]} {
    %c0_i32 = arith.constant 0 : i32
    %0 = arith.cmpi eq, %arg1, %c0_i32 : i32
    %1 = arith.extui %0 : i1 to i32
    %c0_i32_0 = arith.constant 0 : i32
    %2 = arith.cmpi ne, %1, %c0_i32_0 : i32
    scf.if %2 {
      %cst_9 = arith.constant 0.000000e+00 : f32
      %11 = vector.broadcast %cst_9 : f32 to vector<4x8xf32>
      %c0_10 = arith.constant 0 : index
      %c0_11 = arith.constant 0 : index
      %12 = vector.load %arg6[%c0_10, %c0_11] : memref<4x8xf32, #tpu.memory_space<vmem>>, vector<4x8xf32>
      tpu.vector_store %arg6[%c0_10, %c0_11], %11 {strides = array<i32>} : memref<4x8xf32, #tpu.memory_space<vmem>>, vector<4x8xf32>,
    } else {
    }
    %c0 = arith.constant 0 : index
    %c0_1 = arith.constant 0 : index
    %c0_2 = arith.constant 0 : index
    %3 = vector.load %arg2[%c0, %c0_1, %c0_2] : memref<4x8x256xf32, #tpu.memory_space<vmem>>, vector<4x8x256xf32>
    %c0_3 = arith.constant 0 : index
    %c0_4 = arith.constant 0 : index
    %4 = vector.load %arg6[%c0_3, %c0_4] : memref<4x8xf32, #tpu.memory_space<vmem>>, vector<4x8xf32>
    %cst = arith.constant dense<0.000000e+00> : vector<4x8xf32>
    %5 = vector.multi_reduction <add>, %3, %cst [2] : vector<4x8x256xf32> to vector<4x8xf32>
    %6 = arith.addf %4, %5 : vector<4x8xf32>
    %c0_5 = arith.constant 0 : index
    %c0_6 = arith.constant 0 : index
    %7 = vector.load %arg6[%c0_5, %c0_6] : memref<4x8xf32, #tpu.memory_space<vmem>>, vector<4x8xf32>
    tpu.vector_store %arg6[%c0_5, %c0_6], %6 {strides = array<i32>} : memref<4x8xf32, #tpu.memory_space<vmem>>, vector<4x8xf32>,
    %c0_i32_7 = arith.constant 0 : i32
    %8 = arith.cmpi eq, %arg1, %c0_i32_7 : i32
    %9 = arith.extui %8 : i1 to i32
    %c0_i32_8 = arith.constant 0 : i32
    %10 = arith.cmpi ne, %9, %c0_i32_8 : i32
    scf.if %10 {
      %c0_9 = arith.constant 0 : index
      %c0_10 = arith.constant 0 : index
      %11 = vector.load %arg6[%c0_9, %c0_10] : memref<4x8xf32, #tpu.memory_space<vmem>>, vector<4x8xf32>
      %c0_11 = arith.constant 0 : index
      %c0_12 = arith.constant 0 : index
      %12 = vector.load %arg3[%c0_11, %c0_12] : memref<8x128xf32, #tpu.memory_space<vmem>>, vector<8x128xf32>
      %cst_13 = arith.constant dense<0.000000e+00> : vector<4x128xf32>
      %13 = tpu.matmul %11, %12, %cst_13 {dimension_numbers = #tpu.dot_dimension_numbers<[1], [0], [0], [1], [0, 0, 1, 1], [], []>} : vector<4x8xf32>, vector<8x128xf32>, vector<4x128xf32> -> vector<4x128xf32>
      %c0_14 = arith.constant 0 : index
      %c0_15 = arith.constant 0 : index
      %14 = vector.load %arg4[%c0_14, %c0_15] : memref<3x128xf32, #tpu.memory_space<vmem>>, vector<1x128xf32>
      %15 = vector.broadcast %14 : vector<1x128xf32> to vector<4x128xf32>
      %16 = arith.addf %13, %15 : vector<4x128xf32>
      %cst_16 = arith.constant 0.000000e+00 : f32
      %17 = vector.broadcast %cst_16 : f32 to vector<4x128xf32>
      %18 = arith.maximumf %16, %17 : vector<4x128xf32>
      %c1 = arith.constant 1 : index
      %c0_17 = arith.constant 0 : index
      %19 = vector.load %arg4[%c1, %c0_17] : memref<3x128xf32, #tpu.memory_space<vmem>>, vector<1x128xf32>
      %20 = vector.broadcast %19 : vector<1x128xf32> to vector<4x128xf32>
      %21 = arith.mulf %18, %20 : vector<4x128xf32>
      %cst_18 = arith.constant dense<0.000000e+00> : vector<4xf32>
      %22 = vector.multi_reduction <add>, %21, %cst_18 [1] : vector<4x128xf32> to vector<4xf32>
      %23 = vector.shape_cast %22 : vector<4xf32> to vector<4x1xf32>
      %c2 = arith.constant 2 : index
      %c0_19 = arith.constant 0 : index
      %24 = vector.load %arg4[%c2, %c0_19] : memref<3x128xf32, #tpu.memory_space<vmem>>, vector<1x1xf32>
      %25 = vector.broadcast %24 : vector<1x1xf32> to vector<4x1xf32>
      %26 = arith.addf %23, %25 : vector<4x1xf32>
      %27 = tpu.iota {dimensions = array<i32: 1>} : vector<4x128xi32>
      %c32_i32 = arith.constant 32 : i32
      %28 = vector.broadcast %c32_i32 : i32 to vector<4x128xi32>
      %29 = arith.cmpi eq, %27, %28 : vector<4x128xi32>
      %30 = vector.shape_cast %26 : vector<4x1xf32> to vector<4x1xf32>
      %31 = vector.broadcast %30 : vector<4x1xf32> to vector<4x128xf32>
      %32 = arith.select %29, %31, %18 : vector<4x128xi1>, vector<4x128xf32>
      %c0_20 = arith.constant 0 : index
      %c0_21 = arith.constant 0 : index
      %33 = vector.load %arg5[%c0_20, %c0_21] : memref<4x128xf32, #tpu.memory_space<vmem>>, vector<4x128xf32>
      tpu.vector_store %arg5[%c0_20, %c0_21], %32 {strides = array<i32>} : memref<4x128xf32, #tpu.memory_space<vmem>>, vector<4x128xf32>,
    } else {
    }
    return
  }
  func.func @transform_0(%arg0: i32, %arg1: i32) -> (i32, i32, i32) {
    %c0_i32 = arith.constant 0 : i32
    %c0_i32_0 = arith.constant 0 : i32
    return %arg0, %c0_i32, %arg1 : i32, i32, i32
  }
  func.func @transform_1(%arg0: i32, %arg1: i32) -> (i32, i32) {
    %c0_i32 = arith.constant 0 : i32
    %c0_i32_0 = arith.constant 0 : i32
    %c0_i32_1 = arith.constant 0 : i32
    return %c0_i32, %c0_i32_0 : i32, i32
  }
  func.func @transform_2(%arg0: i32, %arg1: i32) -> (i32, i32) {
    %c0_i32 = arith.constant 0 : i32
    %c0_i32_0 = arith.constant 0 : i32
    %c0_i32_1 = arith.constant 0 : i32
    return %c0_i32, %c0_i32_0 : i32, i32
  }
  func.func @transform_3(%arg0: i32, %arg1: i32) -> (i32, i32) {
    %c0_i32 = arith.constant 0 : i32
    %c0_i32_0 = arith.constant 0 : i32
    return %arg0, %c0_i32 : i32, i32
  }
}

</mosaic_0001>

<bundles_post_ra>
// kernel: tpu_custom_call.1
= control target key start
LH: loop header
LB: loop body
LE: loop exit
PB: predicated region body
PF: predicated region fallthrough
CT: control target
= control target key end

     0   :  { %8 = vsyncpa [#allocation4], 0  ;;  %s393_s0 = inlined_call_operand.hbm [shape: f32[4,8,256], index: 0, kind: input, shape index: {}]   ;;  %s394_s1 = inlined_call_operand.hbm [shape: f32[8,128], index: 1, kind: input, shape index: {}]   ;;  %s395_s2 = inlined_call_operand.vmem [shape: f32[3,128], index: 2, kind: input, shape index: {}]   ;;  %s396_s3 = inlined_call_operand.hbm [shape: f32[4,128], index: 3, kind: output, shape index: {}]  }
   0x1   :  { %9 = vsyncpa [#allocation7], 0 }
   0x2   :  { %10 = vsyncpa [#allocation5], 0  ;;  %s318_s12 = smov [#allocation3]   ;;  %s246_s16 = scalar_lea.hbm %s393_s0, 1024 }
   0x3   :  { %s16_s13 = sshll.u32 %s318_s12, 4  ;;  %p247_p0 = scmp.ne.s32.totalorder %s393_s0, %s246_s16  ;;  %s17_s13 = int_to_ptr.vmem [resolvable:$true] %s16_s13 }
   0x4   :  { %p250_p1 = scmp.lt.u32.totalorder %s246_s16, %s393_s0 }
   0x6   :  { %p252_p2 = pnand %p250_p1, %p247_p0 }
   0x8   :  { %255 = shalt.err (!%p252_p2)
}
   0x9   :  { %s256_s21 = scalar_lea.vmem %s17_s13, 1024  ;;  %p261_p4 = scmp.lt.s32.totalorder %s17_s13, %s17_s13 }
   0xa   :  { %p257_p3 = scmp.ne.s32.totalorder %s17_s13, %s256_s21  ;;  %p262_p5 = scmp.lt.s32.totalorder %s256_s21, %s256_s21 }
   0xc   :  { %p263_p6 = por %p262_p5, %p261_p4 }
   0xe   :  { %p264_p7 = pnand %p263_p6, %p257_p3 }
  0x10   :  { %267 = shalt.err (!%p264_p7)
}
  0x11   :  { %s319_s22 = smov 256   ;;  %s320_s23 = smov 16  }
  0x12   :  { %22 = dma.hbm_to_vmem [thread:$0]  %s393_s0, 1024, %s17_s13, [#allocation4], %s319_s22, %s319_s22, %s320_s23  }
  0x13   :  { %s321_s26 = smov [#allocation6]   ;;  %s268_s30 = scalar_lea.hbm %s394_s1, 128 }
  0x14   :  { %s29_s27 = sshll.u32 %s321_s26, 4  ;;  %p269_p8 = scmp.ne.s32.totalorder %s394_s1, %s268_s30  ;;  %s30_s27 = int_to_ptr.vmem [resolvable:$true] %s29_s27 }
  0x15   :  { %p272_p9 = scmp.lt.u32.totalorder %s268_s30, %s394_s1 }
  0x17   :  { %p274_p10 = pnand %p272_p9, %p269_p8 }
  0x19   :  { %277 = shalt.err (!%p274_p10)
}
  0x1a   :  { %s278_s8 = scalar_lea.vmem %s30_s27, 128  ;;  %p283_p12 = scmp.lt.s32.totalorder %s30_s27, %s30_s27 }
  0x1b   :  { %p279_p11 = scmp.ne.s32.totalorder %s30_s27, %s278_s8  ;;  %p284_p13 = scmp.lt.s32.totalorder %s278_s8, %s278_s8 }
  0x1d   :  { %p285_p0 = por %p284_p13, %p283_p12 }
  0x1f   :  { %p286_p1 = pnand %p285_p0, %p279_p11 }
  0x21   :  { %289 = shalt.err (!%p286_p1)
}
  0x22   :  { %32 = dma.hbm_to_vmem [thread:$0]  %s394_s1, 128, %s30_s27, [#allocation7]  }
  0x23   :  { %312 = dma.done.wait [#allocation4], 1024  }
  0x24   :  { %313 = vsyncadd [#allocation4], 4294966272 }
  0x25   :  { %314 = dma.done.wait [#allocation7], 128  }
  0x26   :  { %315 = vsyncadd [#allocation7], 4294967168  ;;  %v47_v0 = vld [vmem:[#allocation3] sm:$0xff]  ;;  %v48_v1 = vld [vmem:[#allocation3 + $0x8] sm:$0xff]  ;;  %vm45_vm0 = vcmask 60416   ;;  %v322_v12 = vmov 0.0   ;;  %v72_v14 = vlaneseq }
  0x27   :  { %v51_v2 = vld [vmem:[#allocation3 + $0x20] sm:$0xff]  ;;  %v56_v3 = vadd.f32 %v48_v1, %v47_v0  ;;  %v52_v4 = vld [vmem:[#allocation3 + $0x28] sm:$0xff]  ;;  %v49_v5 = vld [vmem:[#allocation3 + $0x10] sm:$0xff]  ;;  %46 = vst.msk [vmem:[#allocation2] sm:$0xf] %vm45_vm0, %v322_v12  ;;  %231 = vmatprep.subr.mxu0 %v322_v12  ;;  %vm323_vm1 = vmmov 0  }
  0x28   :  { %v50_v6 = vld [vmem:[#allocation3 + $0x18] sm:$0xff]  ;;  %v62_v7 = vadd.f32 %v52_v4, %v51_v2  ;;  %v53_v8 = vld [vmem:[#allocation3 + $0x30] sm:$0xff]  ;;  %v104_v13 = vld [vmem:[#allocation6] sm:$0xff]  ;;  %233 = vmatprep.mubr.msk.f32.mxu0 %vm323_vm1, %v322_v12  ;;  %v73_v15 = vand.u32 127, %v72_v14  ;;  %v75_v16 = vshrl.u32 %v72_v14, 7  ;;  %vm90_vm2 = vcmask 1041409  }
  0x29   :  { %v54_v9 = vld [vmem:[#allocation3 + $0x38] sm:$0xff]  ;;  %57 = vadd.xlane.f32.xlu0 %v56_v3  ;;  %v59_v10 = vadd.f32 %v50_v6, %v49_v5  ;;  %232 = vmatpush3.msra.mxu0 %v104_v13  ;;  %vm92_vm3 = vcmask 1042434   ;;  %vm94_vm4 = vcmask 1043459   ;;  %vm110_vm5 = vcmask 64512   ;;  %s325_s15 = smov [#allocation8]  }
  0x2a   :  { %63 = vadd.xlane.f32.xlu1 %v62_v7  ;;  %v65_v11 = vadd.f32 %v54_v9, %v53_v8  ;;  %v76_v18 = vsub.s32 %v73_v15, %v75_v16  ;;  %v225_v32 = vld [vmem:[%s395_s2] ss:$0 sm:$0xff]  ;;  %v227_v36 = vld [vmem:[%s395_s2 + $0x1] ss:$0 sm:$0xff]  ;;  %vm191_vm6 = vcmask 1043456   ;;  %v324_v40 = vmov 0  }
  0x2b   :  { %244 = vset.pattern.permute.xlu1 %v324_v40  ;;  %245 = vset.pattern.permute.xlu0 %v324_v40  ;;  %v228_v41 = vld [vmem:[%s395_s2 + $0x2] ss:$0 sm:$0xff]  ;;  %s215_s16 = sshll.u32 %s325_s15, 4  ;;  %vm201_vm7 = vcmp.eq.s32.totalorder %v73_v15, 32  ;;  %s216_s16 = int_to_ptr.vmem [resolvable:$true] %s215_s16 }
  0x2c   :  { %s290_s17 = scalar_lea.vmem %s216_s16, 64  ;;  %p295_p3 = scmp.lt.s32.totalorder %s216_s16, %s216_s16 }
  0x2d   :  { %60 = vadd.xlane.f32.xlu0 %v59_v10  ;;  %p291_p2 = scmp.ne.s32.totalorder %s216_s16, %s290_s17  ;;  %p296_p4 = scmp.lt.s32.totalorder %s290_s17, %s290_s17 }
  0x2e   :  { %66 = vadd.xlane.f32.xlu1 %v65_v11  ;;  %v55_v27 = vld [vmem:[#allocation2] sm:$0xf] }
  0x2f   :  { %p297_p5 = por %p296_p4, %p295_p3 }
  0x31   :  { %p298_p6 = pnand %p297_p5, %p291_p2 }
  0xb6   :  { %v58_v17 = vpop.xlane.xlu0 %57 }
  0xb7   :  { %v64_v19 = vpop.xlane.xlu1 %63  ;;  %v77_v21 = vrot.slane %v58_v17, %v76_v18 }
  0xb8   :  { %v85_v24 = vrot.slane %v64_v19, %v76_v18 }
  0xba   :  { %v61_v20 = vpop.xlane.xlu0 %60 }
  0xbb   :  { %v81_v22 = vrot.slane %v61_v20, %v76_v18  ;;  %v67_v23 = vpop.xlane.xlu1 %66 }
  0xbc   :  { %v89_v25 = vrot.slane %v67_v23, %v76_v18 }
  0xbd   :  { %v91_v26 = vsel %vm90_vm2, %v81_v22, %v77_v21 }
  0xbe   :  { %v93_v28 = vsel %vm92_vm3, %v85_v24, %v91_v26 }
  0xbf   :  { %v95_v29 = vsel %vm94_vm4, %v89_v25, %v93_v28 }
  0xc0   :  { %v97_v30 = vadd.f32 %v95_v29, %v55_v27 }
  0xc2   :  { %99 = vst.msk [vmem:[#allocation2] sm:$0xf] %vm45_vm0, %v97_v30 }
  0xc9   :  { %v103_v31 = vld [vmem:[#allocation2] sm:$0xf] }
  0xca   :  { %234 = vmatmul.mubr.msk.f32.vlgmr.msra.gmra.mrb[0].mxu0 %vm110_vm5, %v103_v31 }
 0x19d   :  { %v180_v33 = vpop.f32.mrb[0].mxu0 }
 0x19e   :  { %v181_v34 = vadd.f32 %v225_v32, %v180_v33  ;;  %v235_v35 = vpop.f32.mrb[1].mxu0 }
 0x1a0   :  { %v184_v37 = vmax.f32 %v181_v34, 0.0 }
 0x1a2   :  { %v190_v38 = vmul.f32 %v227_v36, %v184_v37 }
 0x1a4   :  { %v192_v39 = vsel %vm191_vm6, %v190_v38, 0.0 }
 0x1a5   :  { %193 = vadd.xlane.f32.xlu0 %v192_v39 }
 0x232   :  { %v194_v42 = vpop.xlane.xlu0 %193 }
 0x233   :  { %v200_v43 = vadd.f32 %v228_v41, %v194_v42 }
 0x235   :  { %204 = vperm.xlu1 %244, %v200_v43  }
 0x2b4   :  { %v205_v44 = vpop.permute.xlu1 %204 }
 0x2b5   :  { %v207_v45 = vsel %vm201_vm7, %v205_v44, %v184_v37 }
 0x2b6   :  { %208 = vst [vmem:[#allocation8] sm:$0xf] %v207_v45 }
 0x2b7   :  { %301 = shalt.err (!%p298_p6)
}
 0x2b8   :  { %s302_s2 = scalar_lea.hbm %s396_s3, 64 }
 0x2b9   :  { %p303_p7 = scmp.ne.s32.totalorder %s396_s3, %s302_s2  ;;  %p306_p8 = scmp.lt.u32.totalorder %s302_s2, %s396_s3 }
 0x2bb   :  { %p308_p9 = pnand %p306_p8, %p303_p7 }
 0x2bd   :  { %311 = shalt.err (!%p308_p9)
}
 0x2be   :  { %218 = dma.vmem_to_hbm [thread:$0]  %s216_s16, 64, %s396_s3, [#allocation5]  }
 0x2bf   :  { %316 = dma.done.wait [#allocation5], 64  }
 0x2c0   :  { %317 = vsyncadd [#allocation5], 4294967232 }
 0x2c1   :  { %222 = vsyncpa [#allocation4], 1 }
 0x2c2   :  { %223 = vsyncpa [#allocation7], 1 }
 0x2c3   :  { %224 = vsyncpa [#allocation5], 1 }

</bundles_post_ra>
